<compile_context>
chip_gen: v5e
topology: v5e:2x2
jax: 0.10.0
libtpu: 0.0.40
codegen_flags: <defaults>
</compile_context>

<pallas_src>
import jax
import jax.numpy as jnp
from jax.experimental import pallas as pl
from jax.experimental.pallas import tpu as pltpu


def _gate_kernel(g_ref, x_ref, o_ref):
    # g_ref: SMEM (1,) f32 holding tanh(gate).
    # x_ref / o_ref: VMEM tiles (block_rows, lanes).
    g = g_ref[0]  # f32 scalar
    o_ref[...] = (x_ref[...].astype(jnp.float32) * g).astype(o_ref.dtype)


def _block_bytes_and_vmem_limit():
    """Per-generation (block_bytes, vmem_limit_bytes or None)."""
    try:
        kind = jax.devices()[0].device_kind.lower()
    except Exception:  # pragma: no cover - non-TPU / query failure
        kind = ""
    if "v7" in kind:
        # ~3.2 TB/s HBM per TC: big blocks to amortize the ~0.35us/step cost,
        # explicit VMEM limit with headroom under the 64 MiB physical VMEM.
        return 6 * 1024 * 1024, 48 * 1024 * 1024
    if "v6" in kind:
        return 4 * 1024 * 1024, 32 * 1024 * 1024
    if "v5" in kind:
        # Stay within v5e's 16 MiB default scoped VMEM (2 MiB * 2 bufs * in+out).
        return 2 * 1024 * 1024, None
    return 2 * 1024 * 1024, None  # conservative default


def _round_up(v: int, m: int) -> int:
    return -(-v // m) * m


def gate_forward(
    x: jax.Array,
    gate: jax.Array,
    *,
    min_pallas_bytes: int = 256 * 1024,
    donate_x: bool = False,
) -> jax.Array:
    """Applies tanh(gate) * x via a Pallas TPU kernel.

    x:    any-shape floating-point array (e.g. NCHW activations).
    gate: scalar parameter (0-d array).  Output dtype == x dtype for floats.
    """
    orig_shape = x.shape
    orig_dtype = x.dtype
    total = int(x.size)
    itemsize = jnp.dtype(orig_dtype).itemsize

    # One transcendental total, hoisted out of the kernel.
    g_f32 = jnp.tanh(jnp.asarray(gate, dtype=jnp.float32))

    # Tiny inputs / non-float dtypes: let XLA fuse the trivial scalar multiply.
    if (not jnp.issubdtype(orig_dtype, jnp.floating)) or total == 0:
        # Non-float x follows natural promotion (matches torch promotion).
        return g_f32 * x
    if total * itemsize < min_pallas_bytes:
        return (g_f32 * x.astype(jnp.float32)).astype(orig_dtype)

    x_flat = x.reshape(-1)

    # Ragged totals: run the lane-aligned bulk through the kernel; handle the
    # <128-element tail with a tiny jnp multiply.
    tail = total % 128
    bulk = total - tail
    tail_out = None
    if tail:
        # TODO(synk): fully zero-copy stitching needs a donated output buffer;
        # the final concatenate costs one extra pass over the bulk output.
        tail_out = (g_f32 * x_flat[bulk:].astype(jnp.float32)).astype(orig_dtype)
        x_flat = x_flat[:bulk]
    if bulk == 0:
        return tail_out.reshape(orig_shape)

    # Widest lane-dense width (multiple of 128) dividing the bulk.
    lanes = 128
    for cand in (1024, 512, 256):
        if bulk % cand == 0:
            lanes = cand
            break
    rows = bulk // lanes
    x2d = x_flat.reshape(rows, lanes)

    # Byte-based block sizing, rows a multiple of 8 (sublane), and at least
    # two grid steps when possible so v7x megacore can shard the axis.
    target_bytes, vmem_limit = _block_bytes_and_vmem_limit()
    block_rows = max(8, (target_bytes // (lanes * itemsize)) // 8 * 8)
    if rows > 8:
        half_rows = _round_up(-(-rows // 2), 8)  # cdiv(rows,2) rounded up to 8
        block_rows = min(block_rows, half_rows)
    block_rows = min(block_rows, rows)  # full extent is always legal
    grid = (pl.cdiv(rows, block_rows),)  # ragged last block is masked

    cost = pl.CostEstimate(
        flops=bulk,                        # one multiply per processed element
        transcendentals=0,                 # tanh hoisted to the wrapper
        bytes_accessed=2 * bulk * itemsize,
    )

    compiler_kwargs = dict(dimension_semantics=("parallel",))
    if vmem_limit is not None:
        compiler_kwargs["vmem_limit_bytes"] = vmem_limit

    call_kwargs = {}
    if donate_x:
        # Write the result into x's buffer (input 1 -> output 0).
        call_kwargs["input_output_aliases"] = {1: 0}

    out2d = pl.pallas_call(
        _gate_kernel,
        out_shape=jax.ShapeDtypeStruct((rows, lanes), orig_dtype),
        grid_spec=pl.GridSpec(
            grid=grid,
            in_specs=[
                pl.BlockSpec(memory_space=pltpu.MemorySpace.SMEM),    # tanh(gate)
                pl.BlockSpec((block_rows, lanes), lambda i: (i, 0)),  # x tile
            ],
            out_specs=pl.BlockSpec((block_rows, lanes), lambda i: (i, 0)),
        ),
        compiler_params=pltpu.CompilerParams(**compiler_kwargs),
        cost_estimate=cost,
        **call_kwargs,
    )(g_f32.reshape(1), x2d)

    out_flat = out2d.reshape(-1)
    if tail:
        out_flat = jnp.concatenate([out_flat, tail_out])
    return out_flat.reshape(orig_shape)


if __name__ == "__main__":
    key = jax.random.PRNGKey(0)

    # Small NCHW activations consistent with the module usage.
    B, C, H, W = 2, 4, 16, 16
    x = jax.random.normal(key, (B, C, H, W), dtype=jnp.float32)
    gate_param = jnp.asarray(0.5, dtype=jnp.float32)

    # Small input: fused jnp fast path.
    out = jax.block_until_ready(gate_forward(x, gate_param))
    ref = jnp.tanh(gate_param) * x
    assert out.shape == x.shape and out.dtype == x.dtype
    assert jnp.allclose(out, ref, atol=1e-6, rtol=1e-6)

    # Same small input forced through the Pallas kernel path.
    out_k = jax.block_until_ready(gate_forward(x, gate_param, min_pallas_bytes=0))
    assert jnp.allclose(out_k, ref, atol=1e-6, rtol=1e-6)

    # init=0.0 case: tanh(0) = 0 -> output must be all zeros.
    out0 = jax.block_until_ready(
        gate_forward(x, jnp.asarray(0.0, jnp.float32), min_pallas_bytes=0))
    assert jnp.allclose(out0, jnp.zeros_like(x), atol=0.0)

    # Larger multi-block f32 case (multi-step grid, lane-dense tiles).
    xl = jax.random.normal(jax.random.PRNGKey(1), (8, 64, 64, 96), dtype=jnp.float32)
    outl = jax.block_until_ready(gate_forward(xl, gate_param))
    assert jnp.allclose(outl, jnp.tanh(gate_param) * xl, atol=1e-6, rtol=1e-6)

    # bf16 case: compute-in-f32 then downcast inside the kernel.
    xb = jax.random.normal(jax.random.PRNGKey(2), (4, 8, 128, 128), dtype=jnp.bfloat16)
    outb = jax.block_until_ready(gate_forward(xb, gate_param))
    refb = (jnp.tanh(gate_param) * xb.astype(jnp.float32)).astype(jnp.bfloat16)
    assert outb.dtype == jnp.bfloat16
    assert jnp.allclose(outb.astype(jnp.float32), refb.astype(jnp.float32),
                        atol=2e-2, rtol=2e-2)

    # Ragged total (not a multiple of 128): bulk via kernel, tail via jnp.
    xr = jax.random.normal(jax.random.PRNGKey(3), (1, 3, 101, 1003), dtype=jnp.float32)
    outr = jax.block_until_ready(gate_forward(xr, gate_param))
    assert jnp.allclose(outr, jnp.tanh(gate_param) * xr, atol=1e-6, rtol=1e-6)

    # Donated-input path (output aliases x's buffer inside the custom call).
    f_don = jax.jit(lambda xx: gate_forward(xx, gate_param, donate_x=True),
                    donate_argnums=0)
    out_d = jax.block_until_ready(f_don(xl + 0.0))
    assert jnp.allclose(out_d, jnp.tanh(gate_param) * xl, atol=1e-6, rtol=1e-6)

    print("KERNEL_OK")
</pallas_src>

<mosaic_0001>
module attributes {stable_mosaic.version = 11 : i64} {
  func.func @_gate_kernel(%arg0: i32, %arg1: memref<1xf32, #tpu.memory_space<smem>>, %arg2: memref<2x1024xf32, #tpu.memory_space<vmem>>, %arg3: memref<2x1024xf32, #tpu.memory_space<vmem>>) attributes {dimension_semantics = [#tpu.dimension_semantics<parallel>], iteration_bounds = array<i64: 1>, scalar_prefetch = 0 : i64, scratch_operands = 0 : i64, tpu.core_type = #tpu.core_type<tc>, window_params = [{transform_indices = @transform_0, window_bounds = array<i64: 1>}, {transform_indices = @transform_1, window_bounds = array<i64: 2, 1024>}, {transform_indices = @transform_2, window_bounds = array<i64: 2, 1024>}]} {
    %c0 = arith.constant 0 : index
    %0 = memref.load %arg1[%c0] : memref<1xf32, #tpu.memory_space<smem>>
    %c0_0 = arith.constant 0 : index
    %c0_1 = arith.constant 0 : index
    %1 = vector.load %arg2[%c0_0, %c0_1] : memref<2x1024xf32, #tpu.memory_space<vmem>>, vector<2x1024xf32>
    %2 = vector.broadcast %0 : f32 to vector<2x1024xf32>
    %3 = arith.mulf %1, %2 : vector<2x1024xf32>
    %c0_2 = arith.constant 0 : index
    %c0_3 = arith.constant 0 : index
    %4 = vector.load %arg3[%c0_2, %c0_3] : memref<2x1024xf32, #tpu.memory_space<vmem>>, vector<2x1024xf32>
    tpu.vector_store %arg3[%c0_2, %c0_3], %3 {strides = array<i32>} : memref<2x1024xf32, #tpu.memory_space<vmem>>, vector<2x1024xf32>,
    return
  }
  func.func @transform_0(%arg0: i32) -> i32 {
    %c0_i32 = arith.constant 0 : i32
    %c0_i32_0 = arith.constant 0 : i32
    return %c0_i32 : i32
  }
  func.func @transform_1(%arg0: i32) -> (i32, i32) {
    %c0_i32 = arith.constant 0 : i32
    %c0_i32_0 = arith.constant 0 : i32
    return %arg0, %c0_i32 : i32, i32
  }
  func.func @transform_2(%arg0: i32) -> (i32, i32) {
    %c0_i32 = arith.constant 0 : i32
    %c0_i32_0 = arith.constant 0 : i32
    return %arg0, %c0_i32 : i32, i32
  }
}

</mosaic_0001>

<bundles_post_ra>
// kernel: tpu_custom_call.1
= control target key start
LH: loop header
LB: loop body
LE: loop exit
PB: predicated region body
PF: predicated region fallthrough
CT: control target
= control target key end

     0   :  { %8 = vsyncpa [#allocation4], 0  ;;  %s132_s0 = inlined_call_operand.<no memory space> [shape: f32[1], index: 0, kind: input, shape index: {}]   ;;  %s133_s1 = inlined_call_operand.hbm [shape: f32[2,1024], index: 1, kind: input, shape index: {}]   ;;  %s134_s2 = inlined_call_operand.hbm [shape: f32[2,1024], index: 2, kind: output, shape index: {}]  }
   0x1   :  { %9 = vsyncpa [#allocation5], 0  ;;  %s17_s11 = sshll.u32 %s133_s1, 4  ;;  %s106_s12 = smov [#allocation3]   ;;  %s18_s11 = int_to_ptr.hbm [resolvable:$true] %s17_s11 }
   0x2   :  { %s19_s13 = sshll.u32 %s106_s12, 4  ;;  %s20_s13 = int_to_ptr.vmem [resolvable:$true] %s19_s13 }
   0x3   :  { %22 = dma.hbm_to_vmem [thread:$0]  %s18_s11, 256, %s20_s13, [#allocation4]  }
   0x4   :  { %102 = dma.done.wait [#allocation4], 256  }
   0x5   :  { %103 = vsyncadd [#allocation4], 4294967040  ;;  %v30_v0 = vstv %s132_s0  ;;  %s107_s16 = smov [#allocation6]   ;;  %s42_s20 = sshll.u32 %s134_s2, 4  ;;  %v28_v1 = vld [vmem:[#allocation3] sm:$0xff]  ;;  %v29_v2 = vld [vmem:[#allocation3 + $0x8] sm:$0xff]  ;;  %s43_s20 = int_to_ptr.hbm [resolvable:$true] %s42_s20 }
   0x6   :  { %s40_s17 = sshll.u32 %s107_s16, 4  ;;  %v31_v3 = vmul.f32 %v30_v0, %v28_v1  ;;  %v32_v4 = vmul.f32 %v30_v0, %v29_v2  ;;  %s41_s17 = int_to_ptr.vmem [resolvable:$true] %s40_s17 }
   0x8   :  { %33 = vst [vmem:[#allocation6] sm:$0xff] %v31_v3 }
   0x9   :  { %34 = vst [vmem:[#allocation6 + $0x8] sm:$0xff] %v32_v4 }
   0xa   :  { %45 = dma.vmem_to_hbm [thread:$0]  %s41_s17, 256, %s43_s20, [#allocation5]  }
   0xb   :  { %104 = dma.done.wait [#allocation5], 256  }
   0xc   :  { %105 = vsyncadd [#allocation5], 4294967040 }
   0xd   :  { %50 = vsyncpa [#allocation4], 1 }
   0xe   :  { %51 = vsyncpa [#allocation5], 1 }

</bundles_post_ra>
